<compile_context>
chip_gen: v7x
topology: tpu7x:2x2x1
jax: 0.10.0
libtpu: 0.0.40
codegen_flags: <defaults>
</compile_context>

<pallas_src>
import math

import jax
import jax.numpy as jnp
from jax.experimental import pallas as pl
from jax.experimental.pallas import tpu as pltpu

MATMUL_DTYPE = jnp.float32  # set to jnp.bfloat16 for MXU speedup at larger EMBD

_SQRT_HALF = 0.7071067811865476


def _erf_poly(x):
    """erf(x) via Abramowitz & Stegun 7.1.26 (|abs err| <= 1.5e-7)."""
    a1, a2, a3, a4, a5 = (0.254829592, -0.284496736, 1.421413741,
                          -1.453152027, 1.061405429)
    p = 0.3275911
    sign = jnp.where(x >= 0.0, 1.0, -1.0)
    ax = jnp.abs(x)
    t = 1.0 / (1.0 + p * ax)
    poly = ((((a5 * t + a4) * t + a3) * t + a2) * t + a1) * t
    return sign * (1.0 - poly * jnp.exp(-ax * ax))


def _gelu_exact(x):
    """Exact GELU (matches F.gelu default), evaluated with the erf polynomial."""
    return 0.5 * x * (1.0 + _erf_poly(x * _SQRT_HALF))


# ------------------------------ fused FFN kernel ------------------------------

def _ffn_fused_kernel(x_ref, w1_ref, b1_ref, w2_ref, b2_ref, o_ref):
    # x: (tm, C)  w1/w2: (C, C)  b1/b2: (1, C)  o: (tm, C)
    x = x_ref[...].astype(MATMUL_DTYPE)
    h = jnp.dot(x, w1_ref[...].astype(MATMUL_DTYPE),
                preferred_element_type=jnp.float32) + b1_ref[...]
    h = _gelu_exact(h)                                    # VPU/EUP, f32
    y = jnp.dot(h.astype(MATMUL_DTYPE), w2_ref[...].astype(MATMUL_DTYPE),
                preferred_element_type=jnp.float32) + b2_ref[...]
    o_ref[...] = _gelu_exact(y)


def ffn_forward(x, params, *, tm=512):
    """x: (..., C) float32 -> (..., C) float32.  Single fused pallas_call."""
    w1_t, b1 = params['w1_t'], params['b1']               # (C, C), (C,)
    w2_t, b2 = params['w2_t'], params['b2']
    lead, C = x.shape[:-1], x.shape[-1]
    x2 = x.reshape(-1, C)
    M = x2.shape[0]
    if M < tm or M % tm != 0:                              # toy sizes: one tile
        tm = M
    b1r = b1.reshape(1, C)
    b2r = b2.reshape(1, C)

    out = pl.pallas_call(
        _ffn_fused_kernel,
        grid=(M // tm,),
        in_specs=[
            pl.BlockSpec((tm, C), lambda i: (i, 0)),       # activation tile
            pl.BlockSpec((C, C), lambda i: (0, 0)),        # W1 (in, out)
            pl.BlockSpec((1, C), lambda i: (0, 0)),        # b1
            pl.BlockSpec((C, C), lambda i: (0, 0)),        # W2 (in, out)
            pl.BlockSpec((1, C), lambda i: (0, 0)),        # b2
        ],
        out_specs=pl.BlockSpec((tm, C), lambda i: (i, 0)),
        out_shape=jax.ShapeDtypeStruct((M, C), jnp.float32),
        compiler_params=pltpu.CompilerParams(
            dimension_semantics=("parallel",)),            # megacore on v7x
    )(x2, w1_t, b1r, w2_t, b2r)
    return out.reshape(*lead, C)


# ----------------------------------- main --------------------------------------

if __name__ == "__main__":
    BATCH, BLOCK_SIZE, EMBD = 2, 8, 32                     # small, module-consistent

    key = jax.random.PRNGKey(0)
    kx, k1, k2, k3, k4 = jax.random.split(key, 5)
    scale = 1.0 / math.sqrt(EMBD)
    x = jax.random.normal(kx, (BATCH, BLOCK_SIZE, EMBD), dtype=jnp.float32)
    params = {
        # weights stored pre-transposed (in, out): w_t == torch Linear.weight.T
        'w1_t': scale * jax.random.normal(k1, (EMBD, EMBD), dtype=jnp.float32),
        'b1':   scale * jax.random.normal(k2, (EMBD,), dtype=jnp.float32),
        'w2_t': scale * jax.random.normal(k3, (EMBD, EMBD), dtype=jnp.float32),
        'b2':   scale * jax.random.normal(k4, (EMBD,), dtype=jnp.float32),
    }

    out = jax.jit(ffn_forward)(x, params)
    jax.block_until_ready(out)

    # pure-JAX reference with exact erf GELU (== F.gelu default semantics)
    def ref(x, p):
        h = jax.nn.gelu(x @ p['w1_t'] + p['b1'], approximate=False)
        return jax.nn.gelu(h @ p['w2_t'] + p['b2'], approximate=False)

    expected = ref(x, params)
    assert out.shape == (BATCH, BLOCK_SIZE, EMBD), out.shape
    assert out.dtype == jnp.float32
    assert bool(jnp.all(jnp.isfinite(out)))
    max_err = float(jnp.max(jnp.abs(out - expected)))
    assert max_err < 1e-4, f"mismatch vs reference: {max_err}"
    print("KERNEL_OK")
</pallas_src>

<mosaic_0001>
module attributes {stable_mosaic.version = 11 : i64} {
  func.func @_ffn_fused_kernel(%arg0: i32, %arg1: memref<16x32xf32, #tpu.memory_space<vmem>>, %arg2: memref<32x32xf32, #tpu.memory_space<vmem>>, %arg3: memref<1x32xf32, #tpu.memory_space<vmem>>, %arg4: memref<32x32xf32, #tpu.memory_space<vmem>>, %arg5: memref<1x32xf32, #tpu.memory_space<vmem>>, %arg6: memref<16x32xf32, #tpu.memory_space<vmem>>) attributes {dimension_semantics = [#tpu.dimension_semantics<parallel>], iteration_bounds = array<i64: 1>, scalar_prefetch = 0 : i64, scratch_operands = 0 : i64, tpu.core_type = #tpu.core_type<tc>, window_params = [{transform_indices = @transform_0, window_bounds = array<i64: 16, 32>}, {pipeline_mode = #tpu.pipeline_mode<synchronous>, transform_indices = @transform_1, window_bounds = array<i64: 32, 32>}, {pipeline_mode = #tpu.pipeline_mode<synchronous>, transform_indices = @transform_2, window_bounds = array<i64: 1, 32>}, {pipeline_mode = #tpu.pipeline_mode<synchronous>, transform_indices = @transform_3, window_bounds = array<i64: 32, 32>}, {pipeline_mode = #tpu.pipeline_mode<synchronous>, transform_indices = @transform_4, window_bounds = array<i64: 1, 32>}, {transform_indices = @transform_5, window_bounds = array<i64: 16, 32>}]} {
    %c0 = arith.constant 0 : index
    %c0_0 = arith.constant 0 : index
    %0 = vector.load %arg1[%c0, %c0_0] : memref<16x32xf32, #tpu.memory_space<vmem>>, vector<16x32xf32>
    %c0_1 = arith.constant 0 : index
    %c0_2 = arith.constant 0 : index
    %1 = vector.load %arg2[%c0_1, %c0_2] : memref<32x32xf32, #tpu.memory_space<vmem>>, vector<32x32xf32>
    %cst = arith.constant dense<0.000000e+00> : vector<16x32xf32>
    %2 = tpu.matmul %0, %1, %cst {dimension_numbers = #tpu.dot_dimension_numbers<[1], [0], [0], [1], [0, 0, 1, 1], [], []>} : vector<16x32xf32>, vector<32x32xf32>, vector<16x32xf32> -> vector<16x32xf32>
    %c0_3 = arith.constant 0 : index
    %c0_4 = arith.constant 0 : index
    %3 = vector.load %arg3[%c0_3, %c0_4] : memref<1x32xf32, #tpu.memory_space<vmem>>, vector<1x32xf32>
    %4 = vector.broadcast %3 : vector<1x32xf32> to vector<16x32xf32>
    %5 = arith.addf %2, %4 : vector<16x32xf32>
    %cst_5 = arith.constant 5.000000e-01 : f32
    %6 = vector.broadcast %cst_5 : f32 to vector<16x32xf32>
    %7 = arith.mulf %6, %5 : vector<16x32xf32>
    %cst_6 = arith.constant 0.707106769 : f32
    %8 = vector.broadcast %cst_6 : f32 to vector<16x32xf32>
    %9 = arith.mulf %5, %8 : vector<16x32xf32>
    %cst_7 = arith.constant 0.000000e+00 : f32
    %10 = vector.broadcast %cst_7 : f32 to vector<16x32xf32>
    %11 = arith.cmpf oge, %9, %10 : vector<16x32xf32>
    %cst_8 = arith.constant 1.000000e+00 : f32
    %cst_9 = arith.constant -1.000000e+00 : f32
    %12 = vector.broadcast %cst_8 : f32 to vector<16x32xf32>
    %13 = vector.broadcast %cst_9 : f32 to vector<16x32xf32>
    %14 = arith.select %11, %12, %13 : vector<16x32xi1>, vector<16x32xf32>
    %15 = math.absf %9 : vector<16x32xf32>
    %cst_10 = arith.constant 0.327591091 : f32
    %16 = vector.broadcast %cst_10 : f32 to vector<16x32xf32>
    %17 = arith.mulf %16, %15 : vector<16x32xf32>
    %cst_11 = arith.constant 1.000000e+00 : f32
    %18 = vector.broadcast %cst_11 : f32 to vector<16x32xf32>
    %19 = arith.addf %18, %17 : vector<16x32xf32>
    %cst_12 = arith.constant 1.000000e+00 : f32
    %20 = vector.broadcast %cst_12 : f32 to vector<16x32xf32>
    %21 = arith.divf %20, %19 : vector<16x32xf32>
    %cst_13 = arith.constant 1.06140542 : f32
    %22 = vector.broadcast %cst_13 : f32 to vector<16x32xf32>
    %23 = arith.mulf %22, %21 : vector<16x32xf32>
    %cst_14 = arith.constant -1.45315206 : f32
    %24 = vector.broadcast %cst_14 : f32 to vector<16x32xf32>
    %25 = arith.addf %23, %24 : vector<16x32xf32>
    %26 = arith.mulf %25, %21 : vector<16x32xf32>
    %cst_15 = arith.constant 1.42141378 : f32
    %27 = vector.broadcast %cst_15 : f32 to vector<16x32xf32>
    %28 = arith.addf %26, %27 : vector<16x32xf32>
    %29 = arith.mulf %28, %21 : vector<16x32xf32>
    %cst_16 = arith.constant -0.284496725 : f32
    %30 = vector.broadcast %cst_16 : f32 to vector<16x32xf32>
    %31 = arith.addf %29, %30 : vector<16x32xf32>
    %32 = arith.mulf %31, %21 : vector<16x32xf32>
    %cst_17 = arith.constant 0.254829586 : f32
    %33 = vector.broadcast %cst_17 : f32 to vector<16x32xf32>
    %34 = arith.addf %32, %33 : vector<16x32xf32>
    %35 = arith.mulf %34, %21 : vector<16x32xf32>
    %cst_18 = arith.constant 0.000000e+00 : f32
    %36 = vector.broadcast %cst_18 : f32 to vector<16x32xf32>
    %37 = arith.subf %36, %15 : vector<16x32xf32>
    %38 = arith.mulf %37, %15 : vector<16x32xf32>
    %39 = math.exp %38 : vector<16x32xf32>
    %40 = arith.mulf %35, %39 : vector<16x32xf32>
    %cst_19 = arith.constant 1.000000e+00 : f32
    %41 = vector.broadcast %cst_19 : f32 to vector<16x32xf32>
    %42 = arith.subf %41, %40 : vector<16x32xf32>
    %43 = arith.mulf %14, %42 : vector<16x32xf32>
    %cst_20 = arith.constant 1.000000e+00 : f32
    %44 = vector.broadcast %cst_20 : f32 to vector<16x32xf32>
    %45 = arith.addf %44, %43 : vector<16x32xf32>
    %46 = arith.mulf %7, %45 : vector<16x32xf32>
    %c0_21 = arith.constant 0 : index
    %c0_22 = arith.constant 0 : index
    %47 = vector.load %arg4[%c0_21, %c0_22] : memref<32x32xf32, #tpu.memory_space<vmem>>, vector<32x32xf32>
    %cst_23 = arith.constant dense<0.000000e+00> : vector<16x32xf32>
    %48 = tpu.matmul %46, %47, %cst_23 {dimension_numbers = #tpu.dot_dimension_numbers<[1], [0], [0], [1], [0, 0, 1, 1], [], []>} : vector<16x32xf32>, vector<32x32xf32>, vector<16x32xf32> -> vector<16x32xf32>
    %c0_24 = arith.constant 0 : index
    %c0_25 = arith.constant 0 : index
    %49 = vector.load %arg5[%c0_24, %c0_25] : memref<1x32xf32, #tpu.memory_space<vmem>>, vector<1x32xf32>
    %50 = vector.broadcast %49 : vector<1x32xf32> to vector<16x32xf32>
    %51 = arith.addf %48, %50 : vector<16x32xf32>
    %cst_26 = arith.constant 5.000000e-01 : f32
    %52 = vector.broadcast %cst_26 : f32 to vector<16x32xf32>
    %53 = arith.mulf %52, %51 : vector<16x32xf32>
    %cst_27 = arith.constant 0.707106769 : f32
    %54 = vector.broadcast %cst_27 : f32 to vector<16x32xf32>
    %55 = arith.mulf %51, %54 : vector<16x32xf32>
    %cst_28 = arith.constant 0.000000e+00 : f32
    %56 = vector.broadcast %cst_28 : f32 to vector<16x32xf32>
    %57 = arith.cmpf oge, %55, %56 : vector<16x32xf32>
    %cst_29 = arith.constant 1.000000e+00 : f32
    %cst_30 = arith.constant -1.000000e+00 : f32
    %58 = vector.broadcast %cst_29 : f32 to vector<16x32xf32>
    %59 = vector.broadcast %cst_30 : f32 to vector<16x32xf32>
    %60 = arith.select %57, %58, %59 : vector<16x32xi1>, vector<16x32xf32>
    %61 = math.absf %55 : vector<16x32xf32>
    %cst_31 = arith.constant 0.327591091 : f32
    %62 = vector.broadcast %cst_31 : f32 to vector<16x32xf32>
    %63 = arith.mulf %62, %61 : vector<16x32xf32>
    %cst_32 = arith.constant 1.000000e+00 : f32
    %64 = vector.broadcast %cst_32 : f32 to vector<16x32xf32>
    %65 = arith.addf %64, %63 : vector<16x32xf32>
    %cst_33 = arith.constant 1.000000e+00 : f32
    %66 = vector.broadcast %cst_33 : f32 to vector<16x32xf32>
    %67 = arith.divf %66, %65 : vector<16x32xf32>
    %cst_34 = arith.constant 1.06140542 : f32
    %68 = vector.broadcast %cst_34 : f32 to vector<16x32xf32>
    %69 = arith.mulf %68, %67 : vector<16x32xf32>
    %cst_35 = arith.constant -1.45315206 : f32
    %70 = vector.broadcast %cst_35 : f32 to vector<16x32xf32>
    %71 = arith.addf %69, %70 : vector<16x32xf32>
    %72 = arith.mulf %71, %67 : vector<16x32xf32>
    %cst_36 = arith.constant 1.42141378 : f32
    %73 = vector.broadcast %cst_36 : f32 to vector<16x32xf32>
    %74 = arith.addf %72, %73 : vector<16x32xf32>
    %75 = arith.mulf %74, %67 : vector<16x32xf32>
    %cst_37 = arith.constant -0.284496725 : f32
    %76 = vector.broadcast %cst_37 : f32 to vector<16x32xf32>
    %77 = arith.addf %75, %76 : vector<16x32xf32>
    %78 = arith.mulf %77, %67 : vector<16x32xf32>
    %cst_38 = arith.constant 0.254829586 : f32
    %79 = vector.broadcast %cst_38 : f32 to vector<16x32xf32>
    %80 = arith.addf %78, %79 : vector<16x32xf32>
    %81 = arith.mulf %80, %67 : vector<16x32xf32>
    %cst_39 = arith.constant 0.000000e+00 : f32
    %82 = vector.broadcast %cst_39 : f32 to vector<16x32xf32>
    %83 = arith.subf %82, %61 : vector<16x32xf32>
    %84 = arith.mulf %83, %61 : vector<16x32xf32>
    %85 = math.exp %84 : vector<16x32xf32>
    %86 = arith.mulf %81, %85 : vector<16x32xf32>
    %cst_40 = arith.constant 1.000000e+00 : f32
    %87 = vector.broadcast %cst_40 : f32 to vector<16x32xf32>
    %88 = arith.subf %87, %86 : vector<16x32xf32>
    %89 = arith.mulf %60, %88 : vector<16x32xf32>
    %cst_41 = arith.constant 1.000000e+00 : f32
    %90 = vector.broadcast %cst_41 : f32 to vector<16x32xf32>
    %91 = arith.addf %90, %89 : vector<16x32xf32>
    %92 = arith.mulf %53, %91 : vector<16x32xf32>
    %c0_42 = arith.constant 0 : index
    %c0_43 = arith.constant 0 : index
    %93 = vector.load %arg6[%c0_42, %c0_43] : memref<16x32xf32, #tpu.memory_space<vmem>>, vector<16x32xf32>
    tpu.vector_store %arg6[%c0_42, %c0_43], %92 {strides = array<i32>} : memref<16x32xf32, #tpu.memory_space<vmem>>, vector<16x32xf32>,
    return
  }
  func.func @transform_0(%arg0: i32) -> (i32, i32) {
    %c0_i32 = arith.constant 0 : i32
    %c0_i32_0 = arith.constant 0 : i32
    return %arg0, %c0_i32 : i32, i32
  }
  func.func @transform_1(%arg0: i32) -> (i32, i32) {
    %c0_i32 = arith.constant 0 : i32
    %c0_i32_0 = arith.constant 0 : i32
    %c0_i32_1 = arith.constant 0 : i32
    return %c0_i32, %c0_i32_0 : i32, i32
  }
  func.func @transform_2(%arg0: i32) -> (i32, i32) {
    %c0_i32 = arith.constant 0 : i32
    %c0_i32_0 = arith.constant 0 : i32
    %c0_i32_1 = arith.constant 0 : i32
    return %c0_i32, %c0_i32_0 : i32, i32
  }
  func.func @transform_3(%arg0: i32) -> (i32, i32) {
    %c0_i32 = arith.constant 0 : i32
    %c0_i32_0 = arith.constant 0 : i32
    %c0_i32_1 = arith.constant 0 : i32
    return %c0_i32, %c0_i32_0 : i32, i32
  }
  func.func @transform_4(%arg0: i32) -> (i32, i32) {
    %c0_i32 = arith.constant 0 : i32
    %c0_i32_0 = arith.constant 0 : i32
    %c0_i32_1 = arith.constant 0 : i32
    return %c0_i32, %c0_i32_0 : i32, i32
  }
  func.func @transform_5(%arg0: i32) -> (i32, i32) {
    %c0_i32 = arith.constant 0 : i32
    %c0_i32_0 = arith.constant 0 : i32
    return %arg0, %c0_i32 : i32, i32
  }
}

</mosaic_0001>

<bundles_post_ra>
// kernel: ffn_forward.1
= control target key start
LH: loop header
LB: loop body
LE: loop exit
PB: predicated region body
PF: predicated region fallthrough
CT: control target
= control target key end

     0   :  { %10 = vsyncpa [#allocation3], 0  ;;  %s670_s0 = inlined_call_operand.hbm [shape: f32[16,32], index: 0, kind: input, shape index: {}]   ;;  %s671_s1 = inlined_call_operand.hbm [shape: f32[32,32], index: 1, kind: input, shape index: {}]   ;;  %s672_s2 = inlined_call_operand.vmem [shape: f32[1,32], index: 2, kind: input, shape index: {}]   ;;  %s673_s3 = inlined_call_operand.hbm [shape: f32[32,32], index: 3, kind: input, shape index: {}]   ;;  %s674_s4 = inlined_call_operand.vmem [shape: f32[1,32], index: 4, kind: input, shape index: {}]   ;;  %s675_s5 = inlined_call_operand.hbm [shape: f32[16,32], index: 5, kind: output, shape index: {}]  }
   0x1   :  { %11 = vsyncpa [#allocation6], 0 }
   0x2   :  { %12 = vsyncpa [#allocation4], 0  ;;  %s550_s18 = smov [#allocation5]   ;;  %s551_s20 = smov [#allocation2]  }
   0x3   :  { %s30_s19 = sshll.u32 %s550_s18, 4  ;;  %s18_s21 = sshll.u32 %s551_s20, 4  ;;  %s31_s19 = int_to_ptr.vmem [resolvable:$true] %s30_s19  ;;  %s587_s21 = int_to_ptr.vmem [resolvable:$true] %s18_s21 }
   0x4   :  { %s456_s24 = scalar_lea.hbm %s671_s1, 512 }
   0x5   :  { %p457_p0 = scmp.ne.s32.totalorder %s671_s1, %s456_s24  ;;  %p460_p1 = scmp.lt.u32.totalorder %s456_s24, %s671_s1 }
   0x7   :  { %p462_p2 = pnand %p460_p1, %p457_p0 }
   0x9   :  { %465 = shalt.err (!%p462_p2)
}
   0xa   :  { %s466_s29 = scalar_lea.vmem %s31_s19, 512  ;;  %p471_p4 = scmp.lt.s32.totalorder %s31_s19, %s31_s19 }
   0xb   :  { %p467_p3 = scmp.ne.s32.totalorder %s31_s19, %s466_s29  ;;  %p472_p5 = scmp.lt.s32.totalorder %s466_s29, %s466_s29 }
   0xd   :  { %p473_p6 = por %p472_p5, %p471_p4 }
   0xf   :  { %p474_p7 = pnand %p473_p6, %p467_p3 }
  0x11   :  { %477 = shalt.err (!%p474_p7)
}
  0x12   :  { %s552_s30 = smov 128   ;;  %s553_s6 = smov 8  }
  0x13   :  { %36 = dma.hbm_to_vmem [thread:$0]  %s671_s1, 512, %s31_s19, [#allocation6], %s552_s30, %s552_s30, %s553_s6  }
  0x14   :  { %s478_s11 = scalar_lea.hbm %s670_s0, 256 }
  0x15   :  { %p479_p8 = scmp.ne.s32.totalorder %s670_s0, %s478_s11  ;;  %p482_p9 = scmp.lt.u32.totalorder %s478_s11, %s670_s0 }
  0x17   :  { %p484_p10 = pnand %p482_p9, %p479_p8 }
  0x19   :  { %487 = shalt.err (!%p484_p10)
}
  0x1a   :  { %s488_s16 = scalar_lea.vmem %s587_s21, 256  ;;  %p493_p12 = scmp.lt.s32.totalorder %s587_s21, %s587_s21 }
  0x1b   :  { %p489_p11 = scmp.ne.s32.totalorder %s587_s21, %s488_s16  ;;  %p494_p13 = scmp.lt.s32.totalorder %s488_s16, %s488_s16 }
  0x1d   :  { %p495_p0 = por %p494_p13, %p493_p12 }
  0x1f   :  { %p496_p1 = pnand %p495_p0, %p489_p11 }
  0x21   :  { %499 = shalt.err (!%p496_p1)
}
  0x22   :  { %24 = dma.hbm_to_vmem [thread:$0]  %s670_s0, 256, %s587_s21, [#allocation3], %s552_s30, %s552_s30, %s553_s6  }
  0x23   :  { %s554_s18 = smov [#allocation7]   ;;  %s500_s23 = scalar_lea.hbm %s673_s3, 512 }
  0x24   :  { %s44_s19 = sshll.u32 %s554_s18, 4  ;;  %p501_p2 = scmp.ne.s32.totalorder %s673_s3, %s500_s23  ;;  %s45_s19 = int_to_ptr.vmem [resolvable:$true] %s44_s19 }
  0x25   :  { %p504_p3 = scmp.lt.u32.totalorder %s500_s23, %s673_s3 }
  0x27   :  { %p506_p4 = pnand %p504_p3, %p501_p2 }
  0x29   :  { %509 = shalt.err (!%p506_p4)
}
  0x2a   :  { %s510_s28 = scalar_lea.vmem %s45_s19, 512  ;;  %p515_p6 = scmp.lt.s32.totalorder %s45_s19, %s45_s19 }
  0x2b   :  { %p511_p5 = scmp.ne.s32.totalorder %s45_s19, %s510_s28  ;;  %p516_p7 = scmp.lt.s32.totalorder %s510_s28, %s510_s28 }
  0x2d   :  { %p517_p8 = por %p516_p7, %p515_p6 }
  0x2f   :  { %p518_p9 = pnand %p517_p8, %p511_p5 }
  0x31   :  { %521 = shalt.err (!%p518_p9)
}
  0x32   :  { %50 = dma.hbm_to_vmem [thread:$0]  %s673_s3, 512, %s45_s19, [#allocation6], %s552_s30, %s552_s30, %s553_s6  }
  0x33   :  { %544 = dma.done.wait [#allocation3], 256  }
  0x34   :  { %545 = vsyncadd [#allocation3], 4294967040 }
  0x35   :  { %546 = dma.done.wait [#allocation6], 1024  }
  0x36   :  { %547 = vsyncadd [#allocation6], 4294966272  ;;  %vm75_vm0 = vcmask 261120   ;;  %v64_v0 = vld [vmem:[#allocation5] sm:$0xff]  ;;  %v65_v1 = vld [vmem:[#allocation5 + $0x8] sm:$0xff]  ;;  %v555_v58 = vmov -1.0  }
  0x37   :  { %v66_v2 = vld [vmem:[#allocation5 + $0x10] sm:$0xff]  ;;  %v417_v3 = vpack.c.bf16 %v65_v1, %v64_v0  ;;  %v67_v4 = vld [vmem:[#allocation5 + $0x18] sm:$0xff]  ;;  %v211_v8 = vld [vmem:[#allocation7] sm:$0xff] }
  0x38   :  { %v62_v5 = vld [vmem:[#allocation2] sm:$0xff]  ;;  %v421_v6 = vpack.c.bf16 %v67_v4, %v66_v2  ;;  %v63_v7 = vld [vmem:[#allocation2 + $0x8] sm:$0xff]  ;;  %v212_v9 = vld [vmem:[#allocation7 + $0x8] sm:$0xff] }
  0x39   :  { %403 = vmatprep.mubr.msk.f32.mxu0 %vm75_vm0, %v62_v5  ;;  %418 = vmatprep.subr.bf16.mxu0 %v417_v3  ;;  %v425_v10 = vpack.c.bf16 %v212_v9, %v211_v8  ;;  %v213_v11 = vld [vmem:[#allocation7 + $0x10] sm:$0xff]  ;;  %v214_v12 = vld [vmem:[#allocation7 + $0x18] sm:$0xff] }
  0x3a   :  { %420 = vmatpush3.bf16.msra.mxu0 %v417_v3  ;;  %v429_v13 = vpack.c.bf16 %v214_v12, %v213_v11  ;;  %v377_v14 = vld [vmem:[%s672_s2] ss:$0 sm:$0xff] }
  0x3b   :  { %422 = vmatprep.subr.bf16.mxu0 %v421_v6  ;;  %426 = vmatprep.subr.bf16.mxu1 %v425_v10 }
  0x3c   :  { %428 = vmatpush3.bf16.msra.mxu1 %v425_v10 }
  0x3d   :  { %430 = vmatprep.subr.bf16.mxu1 %v429_v13 }
  0x3e   :  { %424 = vmatpush3.bf16.msra.mxu0 %v421_v6  ;;  %v380_v6 = vld [vmem:[%s674_s4] ss:$0 sm:$0xff]  ;;  %s556_s4 = smov [#allocation8]  }
  0x3f   :  { %s364_s8 = sshll.u32 %s556_s4, 4  ;;  %s365_s8 = int_to_ptr.vmem [resolvable:$true] %s364_s8 }
  0x40   :  { %432 = vmatpush3.bf16.msra.mxu1 %v429_v13  ;;  %s522_s9 = scalar_lea.vmem %s365_s8, 256  ;;  %p527_p11 = scmp.lt.s32.totalorder %s365_s8, %s365_s8 }
  0x41   :  { %404 = vmatmul.mubr.msk.f32.vlgmr.msra.gmra.mrb[0].mxu0 %vm75_vm0, %v63_v7  ;;  %p523_p10 = scmp.ne.s32.totalorder %s365_s8, %s522_s9  ;;  %p528_p12 = scmp.lt.s32.totalorder %s522_s9, %s522_s9 }
  0x43   :  { %p529_p13 = por %p528_p12, %p527_p11 }
  0x45   :  { %p530_p0 = pnand %p529_p13, %p523_p10 }
 0x114   :  { %v405_v15 = vpop.f32.mrb[0].mxu0 }
 0x115   :  { %v154_v16 = vadd.f32 %v405_v15, %v377_v14  ;;  %v148_v17 = vpop.f32.mrb[1].mxu0 }
 0x116   :  { %v149_v18 = vadd.f32 %v377_v14, %v148_v17 }
 0x117   :  { %v160_v19 = vmul.f32 0.70710677, %v154_v16  ;;  %v158_v3 = vmul.f32 0.5, %v154_v16 }
 0x118   :  { %v159_v20 = vmul.f32 0.70710677, %v149_v18  ;;  %v157_v1 = vmul.f32 0.5, %v149_v18 }
 0x119   :  { %v166_v21 = vand.u32 2147483647, %v160_v19  ;;  %vm162_vm1 = vcmp.ge.f32.partialorder %v160_v19, 0.0 }
 0x11a   :  { %v165_v22 = vand.u32 2147483647, %v159_v20  ;;  %vm161_vm2 = vcmp.ge.f32.partialorder %v159_v20, 0.0  ;;  %v164_v59 = vsel %vm162_vm1, 1.0, %v555_v58 }
 0x11b   :  { %v168_v23 = vmul.f32 0.3275911, %v166_v21  ;;  %v194_v27 = vsub.f32 0.0, %v166_v21  ;;  %v163_v62 = vsel %vm161_vm2, 1.0, %v555_v58 }
 0x11c   :  { %v167_v24 = vmul.f32 0.3275911, %v165_v22  ;;  %v193_v28 = vsub.f32 0.0, %v165_v22 }
 0x11d   :  { %v170_v25 = vadd.f32 1.0, %v168_v23  ;;  %v196_v30 = vmul.f32 %v194_v27, %v166_v21 }
 0x11e   :  { %v169_v26 = vadd.f32 1.0, %v167_v24  ;;  %v195_v33 = vmul.f32 %v193_v28, %v165_v22 }
 0x11f   :  { %440 = vrcp.f32 %v170_v25  ;;  %v199_v36 = vmul.f32 1.442695, %v196_v30 }
 0x120   :  { %442 = vrcp.f32 %v169_v26  ;;  %v197_v39 = vmul.f32 1.442695, %v195_v33 }
 0x121   :  { %444 = vpow2.f32 %v199_v36 }
 0x122   :  { %446 = vpow2.f32 %v197_v39 }
 0x129   :  { %v441_v29 = vpop.eup %440 }
 0x12a   :  { %v443_v31 = vpop.eup %442  ;;  %v176_v32 = vmul.f32 1.0614054, %v441_v29 }
 0x12b   :  { %v175_v34 = vmul.f32 1.0614054, %v443_v31  ;;  %v445_v52 = vpop.eup %444 }
 0x12c   :  { %v178_v35 = vadd.f32 -1.4531521, %v176_v32  ;;  %v447_v54 = vpop.eup %446 }
 0x12d   :  { %v177_v37 = vadd.f32 -1.4531521, %v175_v34 }
 0x12e   :  { %v180_v38 = vmul.f32 %v441_v29, %v178_v35 }
 0x12f   :  { %v179_v40 = vmul.f32 %v443_v31, %v177_v37 }
 0x130   :  { %v182_v41 = vadd.f32 1.4214138, %v180_v38 }
 0x131   :  { %v181_v42 = vadd.f32 1.4214138, %v179_v40 }
 0x132   :  { %v184_v43 = vmul.f32 %v441_v29, %v182_v41 }
 0x133   :  { %v183_v44 = vmul.f32 %v443_v31, %v181_v42 }
 0x134   :  { %v186_v45 = vadd.f32 -0.28449672, %v184_v43 }
 0x135   :  { %v185_v46 = vadd.f32 -0.28449672, %v183_v44 }
 0x136   :  { %v188_v47 = vmul.f32 %v441_v29, %v186_v45 }
 0x137   :  { %v187_v48 = vmul.f32 %v443_v31, %v185_v46 }
 0x138   :  { %v190_v49 = vadd.f32 0.2548296, %v188_v47 }
 0x139   :  { %v189_v50 = vadd.f32 0.2548296, %v187_v48 }
 0x13a   :  { %v192_v51 = vmul.f32 %v441_v29, %v190_v49 }
 0x13b   :  { %v191_v53 = vmul.f32 %v443_v31, %v189_v50 }
 0x13c   :  { %v202_v55 = vmul.f32 %v445_v52, %v192_v51 }
 0x13d   :  { %v201_v56 = vmul.f32 %v447_v54, %v191_v53 }
 0x13e   :  { %v204_v57 = vsub.f32 1.0, %v202_v55 }
 0x13f   :  { %v203_v60 = vsub.f32 1.0, %v201_v56 }
 0x140   :  { %v206_v61 = vmul.f32 %v204_v57, %v164_v59 }
 0x141   :  { %v205_v63 = vmul.f32 %v203_v60, %v163_v62 }
 0x142   :  { %v208_v0 = vadd.f32 1.0, %v206_v61 }
 0x143   :  { %v207_v2 = vadd.f32 1.0, %v205_v63 }
 0x144   :  { %v210_v5 = vmul.f32 %v208_v0, %v158_v3 }
 0x145   :  { %v209_v4 = vmul.f32 %v207_v2, %v157_v1 }
 0x147   :  { %414 = vmatprep.mubr.msk.f32.mxu1 %vm75_vm0, %v209_v4 }
 0x148   :  { %415 = vmatmul.mubr.msk.f32.vlgmr.msra.gmra.mrb[0].mxu1 %vm75_vm0, %v210_v5 }
 0x21b   :  { %v416_v7 = vpop.f32.mrb[0].mxu1 }
 0x21c   :  { %v300_v8 = vadd.f32 %v416_v7, %v380_v6  ;;  %v294_v9 = vpop.f32.mrb[1].mxu1 }
 0x21d   :  { %v295_v10 = vadd.f32 %v380_v6, %v294_v9 }
 0x21e   :  { %v306_v11 = vmul.f32 0.70710677, %v300_v8  ;;  %v304_v55 = vmul.f32 0.5, %v300_v8 }
 0x21f   :  { %v305_v12 = vmul.f32 0.70710677, %v295_v10  ;;  %v303_v57 = vmul.f32 0.5, %v295_v10 }
 0x220   :  { %v312_v13 = vand.u32 2147483647, %v306_v11  ;;  %vm308_vm3 = vcmp.ge.f32.partialorder %v306_v11, 0.0 }
 0x221   :  { %v311_v14 = vand.u32 2147483647, %v305_v12  ;;  %vm307_vm4 = vcmp.ge.f32.partialorder %v305_v12, 0.0  ;;  %v310_v50 = vsel %vm308_vm3, 1.0, %v555_v58 }
 0x222   :  { %v314_v15 = vmul.f32 0.3275911, %v312_v13  ;;  %v340_v19 = vsub.f32 0.0, %v312_v13  ;;  %v309_v53 = vsel %vm307_vm4, 1.0, %v555_v58 }
 0x223   :  { %v313_v16 = vmul.f32 0.3275911, %v311_v14  ;;  %v339_v20 = vsub.f32 0.0, %v311_v14 }
 0x224   :  { %v316_v17 = vadd.f32 1.0, %v314_v15  ;;  %v342_v22 = vmul.f32 %v340_v19, %v312_v13 }
 0x225   :  { %v315_v18 = vadd.f32 1.0, %v313_v16  ;;  %v341_v25 = vmul.f32 %v339_v20, %v311_v14 }
 0x226   :  { %448 = vrcp.f32 %v316_v17  ;;  %v345_v28 = vmul.f32 1.442695, %v342_v22 }
 0x227   :  { %450 = vrcp.f32 %v315_v18  ;;  %v343_v31 = vmul.f32 1.442695, %v341_v25 }
 0x228   :  { %452 = vpow2.f32 %v345_v28 }
 0x229   :  { %454 = vpow2.f32 %v343_v31 }
 0x230   :  { %v449_v21 = vpop.eup %448 }
 0x231   :  { %v451_v23 = vpop.eup %450  ;;  %v322_v24 = vmul.f32 1.0614054, %v449_v21 }
 0x232   :  { %v321_v26 = vmul.f32 1.0614054, %v451_v23  ;;  %v453_v44 = vpop.eup %452 }
 0x233   :  { %v324_v27 = vadd.f32 -1.4531521, %v322_v24  ;;  %v455_v46 = vpop.eup %454 }
 0x234   :  { %v323_v29 = vadd.f32 -1.4531521, %v321_v26 }
 0x235   :  { %v326_v30 = vmul.f32 %v449_v21, %v324_v27 }
 0x236   :  { %v325_v32 = vmul.f32 %v451_v23, %v323_v29 }
 0x237   :  { %v328_v33 = vadd.f32 1.4214138, %v326_v30 }
 0x238   :  { %v327_v34 = vadd.f32 1.4214138, %v325_v32 }
 0x239   :  { %v330_v35 = vmul.f32 %v449_v21, %v328_v33 }
 0x23a   :  { %v329_v36 = vmul.f32 %v451_v23, %v327_v34 }
 0x23b   :  { %v332_v37 = vadd.f32 -0.28449672, %v330_v35 }
 0x23c   :  { %v331_v38 = vadd.f32 -0.28449672, %v329_v36 }
 0x23d   :  { %v334_v39 = vmul.f32 %v449_v21, %v332_v37 }
 0x23e   :  { %v333_v40 = vmul.f32 %v451_v23, %v331_v38 }
 0x23f   :  { %v336_v41 = vadd.f32 0.2548296, %v334_v39 }
 0x240   :  { %v335_v42 = vadd.f32 0.2548296, %v333_v40 }
 0x241   :  { %v338_v43 = vmul.f32 %v449_v21, %v336_v41 }
 0x242   :  { %v337_v45 = vmul.f32 %v451_v23, %v335_v42 }
 0x243   :  { %v348_v47 = vmul.f32 %v453_v44, %v338_v43 }
 0x244   :  { %v347_v48 = vmul.f32 %v455_v46, %v337_v45 }
 0x245   :  { %v350_v49 = vsub.f32 1.0, %v348_v47 }
 0x246   :  { %v349_v51 = vsub.f32 1.0, %v347_v48 }
 0x247   :  { %v352_v52 = vmul.f32 %v350_v49, %v310_v50 }
 0x248   :  { %v351_v54 = vmul.f32 %v349_v51, %v309_v53 }
 0x249   :  { %v354_v56 = vadd.f32 1.0, %v352_v52 }
 0x24a   :  { %v353_v59 = vadd.f32 1.0, %v351_v54 }
 0x24b   :  { %v356_v60 = vmul.f32 %v354_v56, %v304_v55 }
 0x24c   :  { %v355_v61 = vmul.f32 %v353_v59, %v303_v57 }
 0x24d   :  { %358 = vst.msk [vmem:[#allocation8 + $0x8] sm:$0xff] %vm75_vm0, %v356_v60 }
 0x24e   :  { %357 = vst.msk [vmem:[#allocation8] sm:$0xff] %vm75_vm0, %v355_v61 }
 0x24f   :  { %533 = shalt.err (!%p530_p0)
}
 0x250   :  { %s534_s12 = scalar_lea.hbm %s675_s5, 256 }
 0x251   :  { %p535_p1 = scmp.ne.s32.totalorder %s675_s5, %s534_s12  ;;  %p538_p2 = scmp.lt.u32.totalorder %s534_s12, %s675_s5 }
 0x253   :  { %p540_p3 = pnand %p538_p2, %p535_p1 }
 0x255   :  { %543 = shalt.err (!%p540_p3)
}
 0x256   :  { %370 = dma.vmem_to_hbm [thread:$0]  %s365_s8, 256, %s675_s5, [#allocation4], %s552_s30, %s552_s30, %s553_s6  }
 0x257   :  { %548 = dma.done.wait [#allocation4], 256  }
 0x258   :  { %549 = vsyncadd [#allocation4], 4294967040 }
 0x259   :  { %374 = vsyncpa [#allocation3], 1 }
 0x25a   :  { %375 = vsyncpa [#allocation6], 1 }
 0x25b   :  { %376 = vsyncpa [#allocation4], 1 }

</bundles_post_ra>
